<compile_context>
chip_gen: v5e
topology: v5e:2x2
jax: 0.10.0
libtpu: 0.0.40
codegen_flags: <defaults>
</compile_context>

<pallas_src>
import functools

import jax
import jax.numpy as jnp
from jax.experimental import pallas as pl
from jax.experimental.pallas import tpu as pltpu


def _round_up(x, m):
    return ((x + m - 1) // m) * m


def _vmem_capacity_bytes():
    """Physical per-core VMEM; conservative 64 MiB (v7x) fallback."""
    try:
        info = pltpu.get_tpu_info()
        cap = getattr(info, "vmem_capacity_bytes", None)
        if cap:
            return int(cap)
    except Exception:
        pass
    return 64 << 20


def _ffn_kernel_f32out(x_ref, w1_ref, b1_ref, w2_ref, b2_ref, o_ref):
    # f32 output: accumulate directly into the resident output tile.
    k = pl.program_id(1)

    h = jnp.dot(x_ref[...], w1_ref[...], preferred_element_type=jnp.float32)
    h = jnp.maximum(h + b1_ref[...], 0.0)            # bias + ReLU (dropout = identity)
    h = h.astype(w2_ref.dtype)
    contrib = jnp.dot(h, w2_ref[...], preferred_element_type=jnp.float32)

    @pl.when(k == 0)
    def _first():
        o_ref[...] = contrib

    @pl.when(k > 0)
    def _rest():
        o_ref[...] += contrib

    @pl.when(k == pl.num_programs(1) - 1)
    def _finalize():
        o_ref[...] += b2_ref[...]


def _ffn_kernel_acc(x_ref, w1_ref, b1_ref, w2_ref, b2_ref, o_ref, acc_ref):
    # Non-f32 output: f32 VMEM accumulator, cast once at the last k-step.
    k = pl.program_id(1)

    h = jnp.dot(x_ref[...], w1_ref[...], preferred_element_type=jnp.float32)
    h = jnp.maximum(h + b1_ref[...], 0.0)
    h = h.astype(w2_ref.dtype)
    contrib = jnp.dot(h, w2_ref[...], preferred_element_type=jnp.float32)

    @pl.when(k == 0)
    def _first():
        acc_ref[...] = contrib

    @pl.when(k > 0)
    def _rest():
        acc_ref[...] += contrib

    @pl.when(k == pl.num_programs(1) - 1)
    def _finalize():
        o_ref[...] = (acc_ref[...] + b2_ref[...]).astype(o_ref.dtype)


@functools.partial(jax.jit, static_argnames=("tm", "tf", "compute_dtype"))
def feed_forward(x, w1, b1, w2, b2, *, tm=None, tf=None, compute_dtype=jnp.bfloat16):
    """x: (batch, seq, d_model) -> (batch, seq, d_model).

    tm: row tile (rows = batch*seq), tf: d_ff reduction tile (None = auto per chip).
    compute_dtype: MXU operand dtype (default bf16); accumulation stays f32 and the
    output keeps x's original dtype.
    """
    batch, seq, d_model = x.shape
    d_ff = w1.shape[1]
    out_dtype = x.dtype
    use_acc = jnp.dtype(out_dtype) != jnp.dtype(jnp.float32)

    # bf16-on-MXU default (f32 accumulation); halves weight/activation DMA bytes.
    if compute_dtype is not None and jnp.dtype(compute_dtype) != jnp.dtype(x.dtype):
        x = x.astype(compute_dtype)
    if compute_dtype is not None:
        w1 = w1.astype(compute_dtype)
        w2 = w2.astype(compute_dtype)
    # Biases are added on the f32 accumulator path.
    b1 = b1.astype(jnp.float32)
    b2 = b2.astype(jnp.float32)

    xbytes = jnp.dtype(x.dtype).itemsize
    wbytes = jnp.dtype(w1.dtype).itemsize
    obytes = jnp.dtype(out_dtype).itemsize

    # Native sublane packing: 16 rows for 2-byte dtypes, 32 for 1-byte, else 8.
    sub = {1: 32, 2: 16}.get(xbytes, 8)

    m = batch * seq

    # ---- tile selection (per-generation via detected VMEM capacity) ----------
    vmem_cap = _vmem_capacity_bytes()
    big_vmem = vmem_cap >= (96 << 20)            # v5e/v6e (128 MiB) vs v7x (64 MiB)
    tm_eff = tm if tm is not None else (1024 if big_vmem else 512)
    tf_eff = tf if tf is not None else (1024 if big_vmem else 512)

    tm_eff = min(tm_eff, _round_up(m, sub))
    tf_eff = min(tf_eff, _round_up(d_ff, 128))

    # Keep >= 2 row tiles when M allows, so the "parallel" axis can shard across
    # v7x's two TensorCores (harmless elsewhere).
    if _round_up(m, tm_eff) // tm_eff < 2 and m > 2 * sub:
        tm_eff = max(sub, _round_up((m + 1) // 2, sub))

    def _vmem_need(tm_, tf_):
        return (
            2 * tm_ * d_model * xbytes           # x tile (double-buffered)
            + 2 * tm_ * d_model * obytes         # out tile
            + 2 * d_model * tf_ * wbytes         # W1 d_ff slice
            + 2 * tf_ * d_model * wbytes         # W2 d_ff slice
            + 2 * tf_ * 4 + 2 * d_model * 4      # biases (f32)
            + (tm_ * d_model * 4 if use_acc else 0)  # acc scratch
            + tm_ * tf_ * 4                      # f32 "h" intermediate
        )

    # Budget ~13/16 of physical VMEM: leaves headroom for Mosaic internal scratch
    # (52 MiB on v7x's 64 MiB, ~104 MiB on v5e/v6e's 128 MiB).
    vmem_budget = (vmem_cap * 13) // 16
    while _vmem_need(tm_eff, tf_eff) > vmem_budget and (tf_eff > 256 or tm_eff > 2 * sub):
        if tf_eff > 256:
            tf_eff = max(128, _round_up(tf_eff // 2, 128))
        else:
            tm_eff = max(sub, _round_up(tm_eff // 2, sub))

    m_pad = _round_up(m, tm_eff)
    dff_pad = _round_up(d_ff, tf_eff)

    # ---- padding (zero-padded d_ff is exact: relu(x@0 + 0) = 0 contributes 0) --
    x2d = x.reshape(m, d_model)
    if m_pad != m:
        x2d = jnp.pad(x2d, ((0, m_pad - m), (0, 0)))
    if dff_pad != d_ff:
        w1 = jnp.pad(w1, ((0, 0), (0, dff_pad - d_ff)))
        b1 = jnp.pad(b1, ((0, dff_pad - d_ff),))
        w2 = jnp.pad(w2, ((0, dff_pad - d_ff), (0, 0)))
    b1_2d = b1.reshape(1, dff_pad)
    b2_2d = b2.reshape(1, d_model)

    grid = (m_pad // tm_eff, dff_pad // tf_eff)
    n_row_tiles = grid[0]

    vmem_need = _vmem_need(tm_eff, tf_eff)
    vmem_limit = int(min(max(int(1.35 * vmem_need) + (2 << 20), 32 << 20), vmem_budget))

    # Weights are re-streamed once per row tile — count that.
    cost = pl.CostEstimate(
        flops=int(4 * m_pad * d_model * dff_pad),
        transcendentals=0,
        bytes_accessed=int(
            m_pad * d_model * (xbytes + obytes)
            + n_row_tiles * 2 * d_model * dff_pad * wbytes
            + n_row_tiles * (dff_pad + d_model) * 4
        ),
    )

    if use_acc:
        kernel = _ffn_kernel_acc
        scratch_shapes = [pltpu.VMEM((tm_eff, d_model), jnp.float32)]
    else:
        kernel = _ffn_kernel_f32out
        scratch_shapes = []

    out2d = pl.pallas_call(
        kernel,
        out_shape=jax.ShapeDtypeStruct((m_pad, d_model), out_dtype),
        grid_spec=pltpu.PrefetchScalarGridSpec(
            num_scalar_prefetch=0,
            grid=grid,
            in_specs=[
                pl.BlockSpec((tm_eff, d_model), lambda i, k: (i, 0)),   # x rows (held over k)
                pl.BlockSpec((d_model, tf_eff), lambda i, k: (0, k)),   # W1 d_ff slice
                pl.BlockSpec((1, tf_eff), lambda i, k: (0, k)),         # b1 slice
                pl.BlockSpec((tf_eff, d_model), lambda i, k: (k, 0)),   # W2 d_ff slice
                pl.BlockSpec((1, d_model), lambda i, k: (0, 0)),        # b2
            ],
            out_specs=pl.BlockSpec((tm_eff, d_model), lambda i, k: (i, 0)),
            scratch_shapes=scratch_shapes,
        ),
        compiler_params=pltpu.CompilerParams(
            dimension_semantics=("parallel", "arbitrary"),
            vmem_limit_bytes=vmem_limit,
        ),
        cost_estimate=cost,
    )(x2d, w1, b1_2d, w2, b2_2d)

    return out2d[:m].reshape(batch, seq, d_model)


def init_params(key, d_model, d_ff, dtype=jnp.float32):
    """Deterministic init mimicking nn.Linear's uniform(-1/sqrt(fan_in), 1/sqrt(fan_in)).
    Weights are returned pre-transposed as (d_in, d_out)."""
    k1, k2, k3, k4 = jax.random.split(key, 4)
    lim1 = 1.0 / jnp.sqrt(d_model)
    lim2 = 1.0 / jnp.sqrt(d_ff)
    w1 = jax.random.uniform(k1, (d_model, d_ff), dtype, -lim1, lim1)
    b1 = jax.random.uniform(k2, (d_ff,), dtype, -lim1, lim1)
    w2 = jax.random.uniform(k3, (d_ff, d_model), dtype, -lim2, lim2)
    b2 = jax.random.uniform(k4, (d_model,), dtype, -lim2, lim2)
    return w1, b1, w2, b2


if __name__ == "__main__":
    batch, seq, d_model, d_ff = 2, 8, 32, 64

    key = jax.random.PRNGKey(0)
    kx, kp = jax.random.split(key)
    x = jax.random.normal(kx, (batch, seq, d_model), jnp.float32)
    w1, b1, w2, b2 = init_params(kp, d_model, d_ff)

    ref = jnp.maximum(x @ w1 + b1, 0.0) @ w2 + b2

    # Default path: bf16 MXU operands, f32 accumulation (loose check).
    out = feed_forward(x, w1, b1, w2, b2)
    out = jax.block_until_ready(out)
    assert out.shape == (batch, seq, d_model)
    assert out.dtype == x.dtype
    assert jnp.allclose(out, ref, atol=1e-1, rtol=1e-1), "bf16 mismatch vs reference"

    # Full-f32 path (tight check vs reference; dropout is identity at inference).
    out_f32 = feed_forward(x, w1, b1, w2, b2, compute_dtype=jnp.float32)
    out_f32 = jax.block_until_ready(out_f32)
    assert out_f32.shape == (batch, seq, d_model)
    assert jnp.allclose(out_f32, ref, atol=1e-5, rtol=1e-5), "f32 mismatch vs reference"

    print("KERNEL_OK")
</pallas_src>

<mosaic_0001>
module attributes {stable_mosaic.version = 11 : i64} {
  func.func @_ffn_kernel_f32out(%arg0: i32, %arg1: i32, %arg2: memref<16x32xbf16, #tpu.memory_space<vmem>>, %arg3: memref<32x128xbf16, #tpu.memory_space<vmem>>, %arg4: memref<1x128xf32, #tpu.memory_space<vmem>>, %arg5: memref<128x32xbf16, #tpu.memory_space<vmem>>, %arg6: memref<1x32xf32, #tpu.memory_space<vmem>>, %arg7: memref<16x32xf32, #tpu.memory_space<vmem>>) attributes {dimension_semantics = [#tpu.dimension_semantics<parallel>, #tpu.dimension_semantics<arbitrary>], iteration_bounds = array<i64: 1, 1>, scalar_prefetch = 0 : i64, scratch_operands = 0 : i64, tpu.core_type = #tpu.core_type<tc>, window_params = [{transform_indices = @transform_0, window_bounds = array<i64: 16, 32>}, {transform_indices = @transform_1, window_bounds = array<i64: 32, 128>}, {transform_indices = @transform_2, window_bounds = array<i64: 1, 128>}, {transform_indices = @transform_3, window_bounds = array<i64: 128, 32>}, {pipeline_mode = #tpu.pipeline_mode<synchronous>, transform_indices = @transform_4, window_bounds = array<i64: 1, 32>}, {transform_indices = @transform_5, window_bounds = array<i64: 16, 32>}]} {
    %c0 = arith.constant 0 : index
    %c0_0 = arith.constant 0 : index
    %0 = vector.load %arg2[%c0, %c0_0] : memref<16x32xbf16, #tpu.memory_space<vmem>>, vector<16x32xbf16>
    %c0_1 = arith.constant 0 : index
    %c0_2 = arith.constant 0 : index
    %1 = vector.load %arg3[%c0_1, %c0_2] : memref<32x128xbf16, #tpu.memory_space<vmem>>, vector<32x128xbf16>
    %cst = arith.constant dense<0.000000e+00> : vector<16x128xf32>
    %2 = tpu.matmul %0, %1, %cst {dimension_numbers = #tpu.dot_dimension_numbers<[1], [0], [0], [1], [0, 0, 1, 1], [], []>} : vector<16x32xbf16>, vector<32x128xbf16>, vector<16x128xf32> -> vector<16x128xf32>
    %c0_3 = arith.constant 0 : index
    %c0_4 = arith.constant 0 : index
    %3 = vector.load %arg4[%c0_3, %c0_4] : memref<1x128xf32, #tpu.memory_space<vmem>>, vector<1x128xf32>
    %4 = vector.broadcast %3 : vector<1x128xf32> to vector<16x128xf32>
    %5 = arith.addf %2, %4 : vector<16x128xf32>
    %cst_5 = arith.constant 0.000000e+00 : f32
    %6 = vector.broadcast %cst_5 : f32 to vector<16x128xf32>
    %7 = arith.maximumf %5, %6 : vector<16x128xf32>
    %8 = arith.truncf %7 : vector<16x128xf32> to vector<16x128xbf16>
    %c0_6 = arith.constant 0 : index
    %c0_7 = arith.constant 0 : index
    %9 = vector.load %arg5[%c0_6, %c0_7] : memref<128x32xbf16, #tpu.memory_space<vmem>>, vector<128x32xbf16>
    %cst_8 = arith.constant dense<0.000000e+00> : vector<16x32xf32>
    %10 = tpu.matmul %8, %9, %cst_8 {dimension_numbers = #tpu.dot_dimension_numbers<[1], [0], [0], [1], [0, 0, 1, 1], [], []>} : vector<16x128xbf16>, vector<128x32xbf16>, vector<16x32xf32> -> vector<16x32xf32>
    %c0_i32 = arith.constant 0 : i32
    %11 = arith.cmpi eq, %arg1, %c0_i32 : i32
    %12 = arith.extui %11 : i1 to i32
    %c0_i32_9 = arith.constant 0 : i32
    %13 = arith.cmpi ne, %12, %c0_i32_9 : i32
    scf.if %13 {
      %c0_14 = arith.constant 0 : index
      %c0_15 = arith.constant 0 : index
      %20 = vector.load %arg7[%c0_14, %c0_15] : memref<16x32xf32, #tpu.memory_space<vmem>>, vector<16x32xf32>
      tpu.vector_store %arg7[%c0_14, %c0_15], %10 {strides = array<i32>} : memref<16x32xf32, #tpu.memory_space<vmem>>, vector<16x32xf32>,
    } else {
    }
    %c0_i32_10 = arith.constant 0 : i32
    %14 = arith.cmpi sgt, %arg1, %c0_i32_10 : i32
    %15 = arith.extui %14 : i1 to i32
    %c0_i32_11 = arith.constant 0 : i32
    %16 = arith.cmpi ne, %15, %c0_i32_11 : i32
    scf.if %16 {
      %c0_14 = arith.constant 0 : index
      %c0_15 = arith.constant 0 : index
      %20 = vector.load %arg7[%c0_14, %c0_15] : memref<16x32xf32, #tpu.memory_space<vmem>>, vector<16x32xf32>
      %21 = arith.addf %20, %10 : vector<16x32xf32>
      %c0_16 = arith.constant 0 : index
      %c0_17 = arith.constant 0 : index
      %22 = vector.load %arg7[%c0_16, %c0_17] : memref<16x32xf32, #tpu.memory_space<vmem>>, vector<16x32xf32>
      tpu.vector_store %arg7[%c0_16, %c0_17], %21 {strides = array<i32>} : memref<16x32xf32, #tpu.memory_space<vmem>>, vector<16x32xf32>,
    } else {
    }
    %c0_i32_12 = arith.constant 0 : i32
    %17 = arith.cmpi eq, %arg1, %c0_i32_12 : i32
    %18 = arith.extui %17 : i1 to i32
    %c0_i32_13 = arith.constant 0 : i32
    %19 = arith.cmpi ne, %18, %c0_i32_13 : i32
    scf.if %19 {
      %c0_14 = arith.constant 0 : index
      %c0_15 = arith.constant 0 : index
      %20 = vector.load %arg7[%c0_14, %c0_15] : memref<16x32xf32, #tpu.memory_space<vmem>>, vector<16x32xf32>
      %c0_16 = arith.constant 0 : index
      %c0_17 = arith.constant 0 : index
      %21 = vector.load %arg6[%c0_16, %c0_17] : memref<1x32xf32, #tpu.memory_space<vmem>>, vector<1x32xf32>
      %22 = vector.broadcast %21 : vector<1x32xf32> to vector<16x32xf32>
      %23 = arith.addf %20, %22 : vector<16x32xf32>
      %c0_18 = arith.constant 0 : index
      %c0_19 = arith.constant 0 : index
      %24 = vector.load %arg7[%c0_18, %c0_19] : memref<16x32xf32, #tpu.memory_space<vmem>>, vector<16x32xf32>
      tpu.vector_store %arg7[%c0_18, %c0_19], %23 {strides = array<i32>} : memref<16x32xf32, #tpu.memory_space<vmem>>, vector<16x32xf32>,
    } else {
    }
    return
  }
  func.func @transform_0(%arg0: i32, %arg1: i32) -> (i32, i32) {
    %c0_i32 = arith.constant 0 : i32
    %c0_i32_0 = arith.constant 0 : i32
    return %arg0, %c0_i32 : i32, i32
  }
  func.func @transform_1(%arg0: i32, %arg1: i32) -> (i32, i32) {
    %c0_i32 = arith.constant 0 : i32
    %c0_i32_0 = arith.constant 0 : i32
    return %c0_i32, %arg1 : i32, i32
  }
  func.func @transform_2(%arg0: i32, %arg1: i32) -> (i32, i32) {
    %c0_i32 = arith.constant 0 : i32
    %c0_i32_0 = arith.constant 0 : i32
    return %c0_i32, %arg1 : i32, i32
  }
  func.func @transform_3(%arg0: i32, %arg1: i32) -> (i32, i32) {
    %c0_i32 = arith.constant 0 : i32
    %c0_i32_0 = arith.constant 0 : i32
    return %arg1, %c0_i32 : i32, i32
  }
  func.func @transform_4(%arg0: i32, %arg1: i32) -> (i32, i32) {
    %c0_i32 = arith.constant 0 : i32
    %c0_i32_0 = arith.constant 0 : i32
    %c0_i32_1 = arith.constant 0 : i32
    return %c0_i32, %c0_i32_0 : i32, i32
  }
  func.func @transform_5(%arg0: i32, %arg1: i32) -> (i32, i32) {
    %c0_i32 = arith.constant 0 : i32
    %c0_i32_0 = arith.constant 0 : i32
    return %arg0, %c0_i32 : i32, i32
  }
}

</mosaic_0001>

<bundles_post_ra>
// kernel: feed_forward.1
= control target key start
LH: loop header
LB: loop body
LE: loop exit
PB: predicated region body
PF: predicated region fallthrough
CT: control target
= control target key end

     0   :  { %s362_s0 = inlined_call_operand.vmem [shape: bf16[16,32], index: 0, kind: input, shape index: {}]   ;;  %s363_s1 = inlined_call_operand.vmem [shape: bf16[32,128], index: 1, kind: input, shape index: {}]   ;;  %s364_s2 = inlined_call_operand.vmem [shape: f32[1,128], index: 2, kind: input, shape index: {}]   ;;  %s365_s3 = inlined_call_operand.vmem [shape: bf16[128,32], index: 3, kind: input, shape index: {}]   ;;  %s366_s4 = inlined_call_operand.vmem [shape: f32[1,32], index: 4, kind: input, shape index: {}]   ;;  %s367_s5 = inlined_call_operand.hbm [shape: f32[16,32], index: 5, kind: output, shape index: {}]  }
   0x1   :  { %v242_v0 = vld [vmem:[%s363_s1 + $0x8] sm:$0xff]  ;;  %v250_v1 = vld [vmem:[%s365_s3 + $0x38] sm:$0xff]  ;;  %v241_v2 = vld [vmem:[%s363_s1] sm:$0xff] }
   0x2   :  { %59 = vmatpush.bf16.msra.mxu0 %v242_v0  ;;  %134 = vmatpush.bf16.msra.mxu1 %v250_v1  ;;  %v249_v3 = vld [vmem:[%s365_s3 + $0x30] sm:$0xff] }
   0x3   :  { %10 = vsyncpa [#allocation3], 0  ;;  %v240_v4 = vld [vmem:[%s362_s0] sm:$0xff]  ;;  %vm49_vm0 = vcmask 261120   ;;  %v248_v5 = vld [vmem:[%s365_s3 + $0x28] sm:$0xff]  ;;  %s183_s19 = sshll.u32 %s367_s5, 4  ;;  %s184_s19 = int_to_ptr.hbm [resolvable:$true] %s183_s19 }
   0x4   :  { %v247_v6 = vld [vmem:[%s365_s3 + $0x20] sm:$0xff]  ;;  %v246_v7 = vld [vmem:[%s365_s3 + $0x18] sm:$0xff]  ;;  %v245_v8 = vld [vmem:[%s365_s3 + $0x10] sm:$0xff]  ;;  %s284_s20 = smov 8  }
   0x5   :  { %v244_v9 = vld [vmem:[%s365_s3 + $0x8] sm:$0xff]  ;;  %v243_v10 = vld [vmem:[%s365_s3] sm:$0xff] }
   0x6   :  { %60 = vmatpush.bf16.msra.mxu0 %v241_v2  ;;  %135 = vmatpush.bf16.msra.mxu1 %v249_v3  ;;  %v254_v12 = vld [vmem:[%s364_s2] ss:$0 sm:$0xff]  ;;  %s282_s2 = smov [#allocation2]  }
   0x7   :  { %v255_v20 = vld [vmem:[%s366_s4] ss:$0 sm:$0xff]  ;;  %s181_s3 = sshll.u32 %s282_s2, 4  ;;  %s283_s4 = smov 128   ;;  %s182_s3 = int_to_ptr.vmem [resolvable:$true] %s181_s3 }
   0x9   :  { %207 = vmatmul.msk.bf16.vlgmr.msra.gmra.mxu0 %vm49_vm0, %v240_v4 }
   0xa   :  { %136 = vmatpush.bf16.msra.mxu1 %v248_v5 }
   0xe   :  { %137 = vmatpush.bf16.msra.mxu1 %v247_v6 }
  0x12   :  { %138 = vmatpush.bf16.msra.mxu1 %v246_v7 }
  0x16   :  { %139 = vmatpush.bf16.msra.mxu1 %v245_v8 }
  0x1a   :  { %140 = vmatpush.bf16.msra.mxu1 %v244_v9 }
  0x1e   :  { %141 = vmatpush.bf16.msra.mxu1 %v243_v10 }
  0x86   :  { %v62_v11 = vpop.f32.mrf.mxu0 }
  0x87   :  { %v63_v13 = vadd.f32 %v254_v12, %v62_v11 }
  0x89   :  { %v67_v16 = vmax.f32 %v63_v13, 0.0 }
  0x8e   :  { %v64_v14 = vpop.f32.mrf.mxu0 }
  0x8f   :  { %v65_v15 = vadd.f32 %v254_v12, %v64_v14 }
  0x91   :  { %v68_v17 = vmax.f32 %v65_v15, 0.0 }
  0x93   :  { %v69_v18 = vpack.c.bf16 %v68_v17, %v67_v16 }
  0x95   :  { %142 = vmatmul.bf16.vlgmr.msra.gmra.mxu1 %v69_v18 }
 0x112   :  { %v143_v19 = vpop.f32.mrf.mxu1 }
 0x113   :  { %152 = vst.msk [vmem:[#allocation2] sm:$0xff] %vm49_vm0, %v143_v19 }
 0x11a   :  { %v167_v21 = vld [vmem:[#allocation2] sm:$0xff]  ;;  %v145_v22 = vpop.f32.mrf.mxu1 }
 0x11b   :  { %v173_v23 = vadd.f32 %v255_v20, %v167_v21  ;;  %153 = vst.msk [vmem:[#allocation2 + $0x8] sm:$0xff] %vm49_vm0, %v145_v22 }
 0x11d   :  { %175 = vst.msk [vmem:[#allocation2] sm:$0xff] %vm49_vm0, %v173_v23 }
 0x122   :  { %v168_v24 = vld [vmem:[#allocation2 + $0x8] sm:$0xff] }
 0x123   :  { %v174_v25 = vadd.f32 %v255_v20, %v168_v24 }
 0x125   :  { %176 = vst.msk [vmem:[#allocation2 + $0x8] sm:$0xff] %vm49_vm0, %v174_v25 }
 0x126   :  { %189 = dma.vmem_to_hbm [thread:$0]  %s182_s3, 256, %s184_s19, [#allocation3], %s283_s4, %s283_s4, %s284_s20  }
 0x127   :  { %280 = dma.done.wait [#allocation3], 256  }
 0x128   :  { %281 = vsyncadd [#allocation3], 4294967040 }
 0x129   :  { %194 = vsyncpa [#allocation3], 1 }

</bundles_post_ra>
